<compile_context>
chip_gen: v6e
topology: v6e:2x2x1
jax: 0.10.0
libtpu: 0.0.40
codegen_flags: <defaults>
</compile_context>

<pallas_src>
import functools
import math

import jax
import jax.numpy as jnp
from jax.experimental import pallas as pl
from jax.experimental.pallas import tpu as pltpu

SCALE_BY_KEEP = False   # False == literal reference code (out-of-place .div() bug)
LANE = 128

# ----------------------- hardware-aware tiling knobs -----------------------
try:   # v5e/v6e: 128 MiB VMEM, v7x: 64 MiB -> smaller row tiles / limit there.
    _VMEM_BYTES = int(pltpu.get_tpu_info().vmem_capacity_bytes)
except Exception:   # conservative fallback (assume v7x-sized VMEM)
    _VMEM_BYTES = 64 * 1024 * 1024

# Rows of 128 lanes per tile (multiple of 8 -> sublane rule always satisfied).
_TR_TARGET = 2048 if _VMEM_BYTES >= 100 * 1024 * 1024 else 1024
_VMEM_LIMIT = min(64 * 1024 * 1024, _VMEM_BYTES // 2)


# ----------------------------- Pallas kernel -------------------------------


def _drop_path_kernel(mask_ref, x_ref, o_ref, *, scale):
    # mask_ref: (N,) int32 in SMEM (scalar prefetch, 0/1 per sample).
    # x_ref / o_ref: (1, tr, LANE) lane-dense tile of sample n.
    n = pl.program_id(0)
    factor = mask_ref[n].astype(jnp.float32) * scale        # 0.0 or scale
    o_ref[...] = (x_ref[...].astype(jnp.float32) * factor).astype(o_ref.dtype)


# ------------------------------ JAX wrapper --------------------------------


def _apply_sample_mask(x, mask_i32, scale):
    """Multiply each sample x[n] by the scalar mask[n] * scale (Pallas kernel)."""
    orig_shape = x.shape
    N = orig_shape[0]
    F = int(math.prod(orig_shape[1:]))

    if F % LANE == 0:
        R, lane = F // LANE, LANE           # lane-dense: unmasked full-lane stores
    else:
        # TODO(synk): pad the feature axis to a multiple of 128 lanes for
        # production shapes; masked-lane stores are correct but slower.
        R, lane = 1, F

    xv = x.reshape(N, R, lane)
    tr = R if R <= _TR_TARGET else _TR_TARGET       # full (legal) or multiple of 8
    grid = (N, pl.cdiv(R, tr))

    out = pl.pallas_call(
        functools.partial(_drop_path_kernel, scale=scale),
        out_shape=jax.ShapeDtypeStruct((N, R, lane), x.dtype),
        grid_spec=pltpu.PrefetchScalarGridSpec(
            num_scalar_prefetch=1,
            grid=grid,
            in_specs=[pl.BlockSpec((1, tr, lane), lambda n, r, mask: (n, r, 0))],
            out_specs=pl.BlockSpec((1, tr, lane), lambda n, r, mask: (n, r, 0)),
        ),
        compiler_params=pltpu.CompilerParams(
            dimension_semantics=("parallel", "parallel"),   # megacore on v7x
            vmem_limit_bytes=_VMEM_LIMIT,
        ),
        cost_estimate=pl.CostEstimate(
            flops=N * F,
            transcendentals=0,
            bytes_accessed=2 * N * F * int(x.dtype.itemsize) + 4 * N,
        ),
    )(mask_i32, xv)
    return out.reshape(orig_shape)


def drop_path(x, *, dpr, training, key=None):
    """Forward pass of the reference DropPath module."""
    if dpr == 0.0 or not training:
        return x                                   # identity, zero kernel launches
    keep_prob = 1.0 - dpr
    N = x.shape[0]
    # Per-sample Bernoulli(keep_prob) mask (shape (N,)) -> SMEM scalar prefetch.
    mask = jax.random.bernoulli(key, keep_prob, (N,)).astype(jnp.int32)
    scale = (1.0 / keep_prob) if SCALE_BY_KEEP else 1.0
    return _apply_sample_mask(x, mask, scale)


# --------------------------------- main -------------------------------------


if __name__ == "__main__":
    key = jax.random.PRNGKey(0)
    k_x, k_mask = jax.random.split(key)

    x = jax.random.normal(k_x, (2, 4, 16, 16), jnp.float32)   # (N, C, H, W)

    # 1) Eval / DPR==0 path: identity (matches `return x` in the reference).
    y_eval = jax.block_until_ready(drop_path(x, dpr=0.1, training=False))
    assert y_eval.shape == x.shape and bool(jnp.all(y_eval == x))

    # 2) Training path: per-sample Bernoulli mask, no 1/keep_prob rescale
    #    (the reference's .div() is out-of-place, so nothing is rescaled).
    dpr = 0.3
    fwd = jax.jit(functools.partial(drop_path, dpr=dpr, training=True))
    y = jax.block_until_ready(fwd(x, key=k_mask))

    keep_prob = 1.0 - dpr
    mask_ref = jax.random.bernoulli(k_mask, keep_prob, (x.shape[0],)).astype(jnp.float32)
    scale_ref = (1.0 / keep_prob) if SCALE_BY_KEEP else 1.0
    y_ref = x * (mask_ref * scale_ref).reshape(-1, 1, 1, 1)

    assert y.shape == x.shape and y.dtype == x.dtype
    assert bool(jnp.all(jnp.isfinite(y)))
    assert bool(jnp.allclose(y, y_ref, atol=0.0, rtol=0.0))

    print("KERNEL_OK")
</pallas_src>

<mosaic_0001>
module attributes {stable_mosaic.version = 11 : i64} {
  func.func @_drop_path_kernel(%arg0: i32, %arg1: i32, %arg2: memref<2xi32, #tpu.memory_space<smem>>, %arg3: memref<1x8x128xf32, #tpu.memory_space<vmem>>, %arg4: memref<1x8x128xf32, #tpu.memory_space<vmem>>) attributes {dimension_semantics = [#tpu.dimension_semantics<parallel>, #tpu.dimension_semantics<parallel>], iteration_bounds = array<i64: 2, 1>, scalar_prefetch = 1 : i64, scratch_operands = 0 : i64, tpu.core_type = #tpu.core_type<tc>, window_params = [{transform_indices = @transform_0, window_bounds = array<i64: 1, 8, 128>}, {transform_indices = @transform_1, window_bounds = array<i64: 1, 8, 128>}]} {
    %0 = arith.index_cast %arg0 : i32 to index
    %1 = memref.load %arg2[%0] : memref<2xi32, #tpu.memory_space<smem>>
    %2 = arith.sitofp %1 : i32 to f32
    %cst = arith.constant 1.000000e+00 : f32
    %3 = arith.mulf %2, %cst : f32
    %c0 = arith.constant 0 : index
    %c0_0 = arith.constant 0 : index
    %c0_1 = arith.constant 0 : index
    %4 = vector.load %arg3[%c0, %c0_0, %c0_1] : memref<1x8x128xf32, #tpu.memory_space<vmem>>, vector<1x8x128xf32>
    %5 = vector.broadcast %3 : f32 to vector<1x8x128xf32>
    %6 = arith.mulf %4, %5 : vector<1x8x128xf32>
    %c0_2 = arith.constant 0 : index
    %c0_3 = arith.constant 0 : index
    %c0_4 = arith.constant 0 : index
    %7 = vector.load %arg4[%c0_2, %c0_3, %c0_4] : memref<1x8x128xf32, #tpu.memory_space<vmem>>, vector<1x8x128xf32>
    tpu.vector_store %arg4[%c0_2, %c0_3, %c0_4], %6 {strides = array<i32>} : memref<1x8x128xf32, #tpu.memory_space<vmem>>, vector<1x8x128xf32>,
    return
  }
  func.func @transform_0(%arg0: i32, %arg1: i32, %arg2: memref<2xi32, #tpu.memory_space<smem>>) -> (i32, i32, i32) {
    %c0_i32 = arith.constant 0 : i32
    %c0_i32_0 = arith.constant 0 : i32
    return %arg0, %arg1, %c0_i32 : i32, i32, i32
  }
  func.func @transform_1(%arg0: i32, %arg1: i32, %arg2: memref<2xi32, #tpu.memory_space<smem>>) -> (i32, i32, i32) {
    %c0_i32 = arith.constant 0 : i32
    %c0_i32_0 = arith.constant 0 : i32
    return %arg0, %arg1, %c0_i32 : i32, i32, i32
  }
}

</mosaic_0001>

<bundles_post_ra>
// kernel: drop_path.1
= control target key start
LH: loop header
LB: loop body
LE: loop exit
PB: predicated region body
PF: predicated region fallthrough
CT: control target
= control target key end

     0   :  { %s342_s0 = inlined_call_operand.vmem [shape: s32[2], index: 0, kind: input, shape index: {}]   ;;  %s343_s1 = inlined_call_operand.vmem [shape: f32[2,8,128], index: 1, kind: input, shape index: {}]   ;;  %s344_s2 = inlined_call_operand.vmem [shape: f32[2,8,128], index: 2, kind: output, shape index: {}]  }
   0x1   :  { %s7_s11 = sshll.u32 %s342_s0, 4  ;;  %s8_s11 = int_to_ptr.vmem [resolvable:$true] %s7_s11 }
   0x2   :  { %s264_s12 = scalar_lea.vmem %s8_s11, 16  ;;  %p269_p1 = scmp.lt.s32.totalorder %s8_s11, %s8_s11 }
   0x3   :  { %p265_p0 = scmp.ne.s32.totalorder %s8_s11, %s264_s12  ;;  %p270_p2 = scmp.lt.s32.totalorder %s264_s12, %s264_s12 }
   0x5   :  { %p271_p3 = por %p270_p2, %p269_p1 }
   0x7   :  { %p272_p4 = pnand %p271_p3, %p265_p0 }
   0x9   :  { %275 = shalt.err (!%p272_p4)  }
   0xa   :  { %s302_s13 = smov [#allocation3]  }
   0xb   :  { %10 = dma.vmem_to_smem %s8_s11, 16, %s302_s13, [#allocation2] }
   0xc   :  { %288 = dma.done.wait [#allocation2], 16 }
   0xd   :  { %289 = vsyncadd [#allocation2], 4294967280 }
   0xe   :  { %12 = sfence }
   0xf   :  { %s321_s14 = smov 0   ;;  %s323_s15 = smov 0  }
  0x10   :  { %s325_s16 = smov 0  }
  0x11 LB: > { %s30_s0 = sadd.s32 1, %s296_s15  ;;  %p234_p5 = scmp.ge.s32.totalorder %s300_s16, 1  ;;  %s300_s16 = sphi %s325_s16, %s18_s16   ;;  %s296_s15 = sphi %s323_s15, %s346_s15   ;;  %s292_s14 = sphi %s321_s14, %s345_s14  }
  0x12   : > { %p32_p6 = scmp.ge.s32.totalorder %s30_s0, 2  ;;  %p112_p7 = scmp.lt.s32.totalorder %s300_s16, 3 }
  0x14   : > { %s348_s0 = smov (%p32_p6, %s30_s0), 0  ;;  %p113_p8 = pnand %p234_p5, %p112_p7 }
  0x15   : > { %p136_p9 = scmp.lt.s32.totalorder (!%p113_p8), %s292_s14, 1  ;;  %s150_s17 = sld [smem:[#allocation3 + %s292_s14]] (!%p113_p8) }
  0x16   : > { %116 = sbr.rel (%p113_p8) target bundleno = 34 (0x22), region = 24 }
  0x1b   : > { %s350_s14 = smov (!%p136_p9, %s292_s14), 1  ;;  %s151_s22 = scvt.s32.f32 %s150_s17 }
  0x1c   : > { %s235_s18 = sshll.u32 %s350_s14, 3 }
  0x1d   : > { %s142_s21 = scalar_lea.vmem %s343_s1, %s235_s18  ;;  %s149_s25 = scalar_lea.vmem %s344_s2, %s235_s18  ;;  %v153_v1 = vstv %s151_s22 }
  0x1e   : > { %v152_v0 = vld [vmem:[%s142_s21] sm:$0xff] }
  0x1f   : > { %v154_v2 = vmul.f32 %v153_v1, %v152_v0 }
  0x21   : > { %155 = vst [vmem:[%s149_s25] sm:$0xff] %v154_v2 }
  0x22 PF: > { %s18_s16 = sadd.s32 1, %s300_s16   ;;  %s345_s14 = smov %s296_s15 }
  0x23   : > { %p15_p10 = scmp.ge.s32.totalorder %s18_s16, 4   ;;  %s346_s15 = smov %s348_s0 }
  0x25   :  { %17 = sbr.rel (!%p15_p10) target bundleno = 17 (0x11), region = 54 }

</bundles_post_ra>
